<compile_context>
chip_gen: v7x
topology: tpu7x:2x2x1
jax: 0.10.0
libtpu: 0.0.40
codegen_flags: <defaults>
</compile_context>

<pallas_src>
import math

import jax
import jax.numpy as jnp
from jax.experimental import pallas as pl
from jax.experimental.pallas import tpu as pltpu


# ----------------------------- Pallas kernel ------------------------------ #

def _ddpg_actor_critic_kernel(
    idc_ref,    # (TB, id_cate_dim + 1)          rows augmented with trailing 1
    x_ref,      # (TB, input_dim + 1)            rows augmented with trailing 1
    we1_ref,    # (id_cate_dim + 1, emb_hidden)  last row = be1
    we2_ref,    # (emb_hidden, embedding_dim)
    be2_ref,    # (1, embedding_dim)
    wf1e_ref,   # (embedding_dim, base_hidden)   rows of Wf1 hit by `embedding`
    wf1x_ref,   # (input_dim + 1, base_hidden)   rows of Wf1 hit by `x`; last row = bf1
    wf2_ref,    # (base_hidden, out_pad)         zero-padded to 128-lane multiple
    bf2_ref,    # (1, out_pad)                   zero-padded to 128-lane multiple
    out_ref,    # (TB, out_pad)                  lane-dense output tile
):
    cdt = we1_ref.dtype  # compute dtype fed to the MXU (f32 or bf16)

    def swish(v):  # SiLU; logistic goes to the EUP slot
        return v * jax.nn.sigmoid(v)

    # --- embedding_mlp: Linear(+folded bias) -> swish -> Linear -> tanh ---
    h = jnp.dot(idc_ref[...], we1_ref[...], preferred_element_type=jnp.float32)
    h = swish(h)
    emb = jnp.dot(h.astype(cdt), we2_ref[...], preferred_element_type=jnp.float32)
    emb = jnp.tanh(emb + be2_ref[...].astype(jnp.float32))

    # --- fusion: Linear(cat([emb, x]) [+folded bias]) -> swish -> Linear ---
    z = (jnp.dot(emb.astype(cdt), wf1e_ref[...], preferred_element_type=jnp.float32)
         + jnp.dot(x_ref[...], wf1x_ref[...], preferred_element_type=jnp.float32))
    h2 = swish(z)
    y = (jnp.dot(h2.astype(cdt), wf2_ref[...], preferred_element_type=jnp.float32)
         + bf2_ref[...].astype(jnp.float32))
    out_ref[...] = y.astype(out_ref.dtype)


# ------------------------------- wrappers ---------------------------------- #

def _round_up(n, m):
    return ((n + m - 1) // m) * m


def ddpg_actor_critic_forward_batched(id_cate, x, params, *,
                                      compute_dtype=jnp.float32,
                                      block_rows=128):
    """id_cate: (B, id_cate_dim), x: (B, input_dim)  ->  y: (B, output_dim) f32."""
    we1, be1, we2, be2, wf1, bf1, wf2, bf2 = params
    B = id_cate.shape[0]
    embedding_dim = we2.shape[1]
    output_dim = wf2.shape[1]

    # Batch tile: multiple of 8 (f32 sublane), at most block_rows.
    tb = min(block_rows, _round_up(B, 8))
    bp = _round_up(B, tb)
    grid = (bp // tb,)

    # Lane-dense output: pad the output column count to a multiple of 128 so the
    # final store is an unmasked full-width vst and the HBM writeback slab is dense.
    out_pad = _round_up(max(output_dim, 128), 128)

    def pad_rows(a):
        return a if a.shape[0] == bp else jnp.pad(a, ((0, bp - a.shape[0]), (0, 0)))

    # Append a constant-1 column so the first-layer biases fold into the weights.
    ones = jnp.ones((bp, 1), jnp.float32)
    idc_aug = jnp.concatenate([pad_rows(id_cate.astype(jnp.float32)), ones],
                              axis=1).astype(compute_dtype)
    x_aug = jnp.concatenate([pad_rows(x.astype(jnp.float32)), ones],
                            axis=1).astype(compute_dtype)

    # Fold be1 into We1 and bf1 into the x-block of Wf1; split Wf1 to fuse the concat.
    we1_aug = jnp.concatenate([we1, be1], axis=0).astype(compute_dtype)
    wf1_e = wf1[:embedding_dim, :].astype(compute_dtype)
    wf1x_aug = jnp.concatenate([wf1[embedding_dim:, :], bf1], axis=0).astype(compute_dtype)
    we2_c = we2.astype(compute_dtype)
    be2_f = be2.astype(jnp.float32)
    # Zero-pad the final layer to out_pad lanes (extra MXU columns are free).
    wf2_p = jnp.pad(wf2, ((0, 0), (0, out_pad - output_dim))).astype(compute_dtype)
    bf2_p = jnp.pad(bf2, ((0, 0), (0, out_pad - output_dim))).astype(jnp.float32)

    def batch_spec(ncols):
        return pl.BlockSpec((tb, ncols), lambda b: (b, 0))

    def resident(arr):  # full array, VMEM-resident across the whole grid
        return pl.BlockSpec(arr.shape, lambda b: (0, 0))

    inputs = (idc_aug, x_aug, we1_aug, we2_c, be2_f, wf1_e, wf1x_aug, wf2_p, bf2_p)
    in_specs = [
        batch_spec(idc_aug.shape[1]),
        batch_spec(x_aug.shape[1]),
        resident(we1_aug),
        resident(we2_c),
        resident(be2_f),
        resident(wf1_e),
        resident(wf1x_aug),
        resident(wf2_p),
        resident(bf2_p),
    ]

    y = pl.pallas_call(
        _ddpg_actor_critic_kernel,
        out_shape=jax.ShapeDtypeStruct((bp, out_pad), jnp.float32),
        grid=grid,
        in_specs=in_specs,
        out_specs=pl.BlockSpec((tb, out_pad), lambda b: (b, 0)),
        compiler_params=pltpu.CompilerParams(
            dimension_semantics=("parallel",)),
    )(*inputs)
    return y[:B, :output_dim]


def ddpg_actor_critic_forward(id_cate, x, params, **kwargs):
    """Matches the PyTorch module's unbatched forward: 1-D in -> 1-D out."""
    y = ddpg_actor_critic_forward_batched(id_cate[None, :], x[None, :], params, **kwargs)
    return y[0]


# ------------------------- deterministic parameters ------------------------ #

def _linear_init(key, fan_in, fan_out):
    """Mimic torch.nn.Linear default init; weight stored transposed as (in, out)."""
    k = 1.0 / math.sqrt(fan_in)
    kw, kb = jax.random.split(key)
    w = jax.random.uniform(kw, (fan_in, fan_out), jnp.float32, -k, k)
    b = jax.random.uniform(kb, (1, fan_out), jnp.float32, -k, k)
    return w, b


def make_params(key, input_dim, output_dim, id_cate_dim, embedding_dim,
                base_hidden, emb_hidden):
    k1, k2, k3, k4 = jax.random.split(key, 4)
    # embedding_mlp: Linear(id_cate_dim, emb_hidden) -> swish -> Linear(emb_hidden, embedding_dim) -> tanh
    we1, be1 = _linear_init(k1, id_cate_dim, emb_hidden)
    we2, be2 = _linear_init(k2, emb_hidden, embedding_dim)
    # fusion: Linear(embedding_dim+input_dim, base_hidden) -> swish -> Linear(base_hidden, output_dim)
    wf1, bf1 = _linear_init(k3, embedding_dim + input_dim, base_hidden)
    wf2, bf2 = _linear_init(k4, base_hidden, output_dim)
    return (we1, be1, we2, be2, wf1, bf1, wf2, bf2)


# ------------------------------ reference ---------------------------------- #

def reference_forward(id_cate, x, params):
    (we1, be1, we2, be2, wf1, bf1, wf2, bf2) = params
    swish = lambda v: v * jax.nn.sigmoid(v)
    h = swish(id_cate[None, :] @ we1 + be1)
    emb = jnp.tanh(h @ we2 + be2)
    z = jnp.concatenate([emb[0], x])[None, :]
    h2 = swish(z @ wf1 + bf1)
    return (h2 @ wf2 + bf2)[0]


# --------------------------------- main ------------------------------------ #

if __name__ == "__main__":
    # Small shapes consistent with the module's forward.
    input_dim = 24
    output_dim = 8
    id_cate_dim = 8
    embedding_dim = 16
    base_hidden = 32       # base_hidden_dims = 32
    emb_hidden = 32        # embedding_hidden_dims = 32
    batch = 256            # 2 grid steps of 128 rows

    key = jax.random.PRNGKey(0)
    kp, ki, kx = jax.random.split(key, 3)

    params = make_params(kp, input_dim, output_dim, id_cate_dim,
                         embedding_dim, base_hidden, emb_hidden)
    id_cate_b = jax.random.normal(ki, (batch, id_cate_dim), jnp.float32)
    x_b = jax.random.normal(kx, (batch, input_dim), jnp.float32)

    # Batched f32 path.
    y_b = jax.block_until_ready(
        ddpg_actor_critic_forward_batched(id_cate_b, x_b, params))
    y_ref_b = jax.vmap(lambda i, xx: reference_forward(i, xx, params))(id_cate_b, x_b)
    assert y_b.shape == (batch, output_dim)
    assert jnp.allclose(y_b, y_ref_b, atol=2e-5, rtol=2e-5), \
        float(jnp.max(jnp.abs(y_b - y_ref_b)))

    # Unbatched path (the module's exact signature: 1-D in, 1-D out).
    y1 = jax.block_until_ready(
        ddpg_actor_critic_forward(id_cate_b[0], x_b[0], params))
    assert y1.shape == (output_dim,)
    assert jnp.allclose(y1, y_ref_b[0], atol=2e-5, rtol=2e-5)

    # bf16 compute path (v6e/v7x MXU-native); f32 accumulation keeps error small.
    y_bf16 = jax.block_until_ready(
        ddpg_actor_critic_forward_batched(id_cate_b, x_b, params,
                                          compute_dtype=jnp.bfloat16))
    assert jnp.allclose(y_bf16, y_ref_b, atol=1e-1), \
        float(jnp.max(jnp.abs(y_bf16 - y_ref_b)))

    print("KERNEL_OK")
</pallas_src>

<mosaic_0001>
module attributes {stable_mosaic.version = 11 : i64} {
  func.func @_ddpg_actor_critic_kernel(%arg0: i32, %arg1: memref<128x9xf32, #tpu.memory_space<vmem>>, %arg2: memref<128x25xf32, #tpu.memory_space<vmem>>, %arg3: memref<9x32xf32, #tpu.memory_space<vmem>>, %arg4: memref<32x16xf32, #tpu.memory_space<vmem>>, %arg5: memref<1x16xf32, #tpu.memory_space<vmem>>, %arg6: memref<16x32xf32, #tpu.memory_space<vmem>>, %arg7: memref<25x32xf32, #tpu.memory_space<vmem>>, %arg8: memref<32x128xf32, #tpu.memory_space<vmem>>, %arg9: memref<1x128xf32, #tpu.memory_space<vmem>>, %arg10: memref<128x128xf32, #tpu.memory_space<vmem>>) attributes {dimension_semantics = [#tpu.dimension_semantics<parallel>], iteration_bounds = array<i64: 2>, scalar_prefetch = 0 : i64, scratch_operands = 0 : i64, tpu.core_type = #tpu.core_type<tc>, window_params = [{transform_indices = @transform_0, window_bounds = array<i64: 128, 9>}, {transform_indices = @transform_1, window_bounds = array<i64: 128, 25>}, {pipeline_mode = #tpu.pipeline_mode<synchronous>, transform_indices = @transform_2, window_bounds = array<i64: 9, 32>}, {pipeline_mode = #tpu.pipeline_mode<synchronous>, transform_indices = @transform_3, window_bounds = array<i64: 32, 16>}, {pipeline_mode = #tpu.pipeline_mode<synchronous>, transform_indices = @transform_4, window_bounds = array<i64: 1, 16>}, {pipeline_mode = #tpu.pipeline_mode<synchronous>, transform_indices = @transform_5, window_bounds = array<i64: 16, 32>}, {pipeline_mode = #tpu.pipeline_mode<synchronous>, transform_indices = @transform_6, window_bounds = array<i64: 25, 32>}, {pipeline_mode = #tpu.pipeline_mode<synchronous>, transform_indices = @transform_7, window_bounds = array<i64: 32, 128>}, {pipeline_mode = #tpu.pipeline_mode<synchronous>, transform_indices = @transform_8, window_bounds = array<i64: 1, 128>}, {transform_indices = @transform_9, window_bounds = array<i64: 128, 128>}]} {
    %c0 = arith.constant 0 : index
    %c0_0 = arith.constant 0 : index
    %0 = vector.load %arg1[%c0, %c0_0] : memref<128x9xf32, #tpu.memory_space<vmem>>, vector<128x9xf32>
    %c0_1 = arith.constant 0 : index
    %c0_2 = arith.constant 0 : index
    %1 = vector.load %arg3[%c0_1, %c0_2] : memref<9x32xf32, #tpu.memory_space<vmem>>, vector<9x32xf32>
    %cst = arith.constant dense<0.000000e+00> : vector<128x32xf32>
    %2 = tpu.matmul %0, %1, %cst {dimension_numbers = #tpu.dot_dimension_numbers<[1], [0], [0], [1], [0, 0, 1, 1], [], []>} : vector<128x9xf32>, vector<9x32xf32>, vector<128x32xf32> -> vector<128x32xf32>
    %3 = arith.negf %2 : vector<128x32xf32>
    %4 = math.exp %3 : vector<128x32xf32>
    %cst_3 = arith.constant 1.000000e+00 : f32
    %5 = vector.broadcast %cst_3 : f32 to vector<128x32xf32>
    %6 = arith.addf %5, %4 : vector<128x32xf32>
    %7 = arith.divf %5, %6 : vector<128x32xf32>
    %8 = arith.mulf %2, %7 : vector<128x32xf32>
    %c0_4 = arith.constant 0 : index
    %c0_5 = arith.constant 0 : index
    %9 = vector.load %arg4[%c0_4, %c0_5] : memref<32x16xf32, #tpu.memory_space<vmem>>, vector<32x16xf32>
    %cst_6 = arith.constant dense<0.000000e+00> : vector<128x16xf32>
    %10 = tpu.matmul %8, %9, %cst_6 {dimension_numbers = #tpu.dot_dimension_numbers<[1], [0], [0], [1], [0, 0, 1, 1], [], []>} : vector<128x32xf32>, vector<32x16xf32>, vector<128x16xf32> -> vector<128x16xf32>
    %c0_7 = arith.constant 0 : index
    %c0_8 = arith.constant 0 : index
    %11 = vector.load %arg5[%c0_7, %c0_8] : memref<1x16xf32, #tpu.memory_space<vmem>>, vector<1x16xf32>
    %12 = vector.broadcast %11 : vector<1x16xf32> to vector<128x16xf32>
    %13 = arith.addf %10, %12 : vector<128x16xf32>
    %14 = math.tanh %13 : vector<128x16xf32>
    %c0_9 = arith.constant 0 : index
    %c0_10 = arith.constant 0 : index
    %15 = vector.load %arg6[%c0_9, %c0_10] : memref<16x32xf32, #tpu.memory_space<vmem>>, vector<16x32xf32>
    %cst_11 = arith.constant dense<0.000000e+00> : vector<128x32xf32>
    %16 = tpu.matmul %14, %15, %cst_11 {dimension_numbers = #tpu.dot_dimension_numbers<[1], [0], [0], [1], [0, 0, 1, 1], [], []>} : vector<128x16xf32>, vector<16x32xf32>, vector<128x32xf32> -> vector<128x32xf32>
    %c0_12 = arith.constant 0 : index
    %c0_13 = arith.constant 0 : index
    %17 = vector.load %arg2[%c0_12, %c0_13] : memref<128x25xf32, #tpu.memory_space<vmem>>, vector<128x25xf32>
    %c0_14 = arith.constant 0 : index
    %c0_15 = arith.constant 0 : index
    %18 = vector.load %arg7[%c0_14, %c0_15] : memref<25x32xf32, #tpu.memory_space<vmem>>, vector<25x32xf32>
    %cst_16 = arith.constant dense<0.000000e+00> : vector<128x32xf32>
    %19 = tpu.matmul %17, %18, %cst_16 {dimension_numbers = #tpu.dot_dimension_numbers<[1], [0], [0], [1], [0, 0, 1, 1], [], []>} : vector<128x25xf32>, vector<25x32xf32>, vector<128x32xf32> -> vector<128x32xf32>
    %20 = arith.addf %16, %19 : vector<128x32xf32>
    %21 = arith.negf %20 : vector<128x32xf32>
    %22 = math.exp %21 : vector<128x32xf32>
    %cst_17 = arith.constant 1.000000e+00 : f32
    %23 = vector.broadcast %cst_17 : f32 to vector<128x32xf32>
    %24 = arith.addf %23, %22 : vector<128x32xf32>
    %25 = arith.divf %23, %24 : vector<128x32xf32>
    %26 = arith.mulf %20, %25 : vector<128x32xf32>
    %c0_18 = arith.constant 0 : index
    %c0_19 = arith.constant 0 : index
    %27 = vector.load %arg8[%c0_18, %c0_19] : memref<32x128xf32, #tpu.memory_space<vmem>>, vector<32x128xf32>
    %cst_20 = arith.constant dense<0.000000e+00> : vector<128x128xf32>
    %28 = tpu.matmul %26, %27, %cst_20 {dimension_numbers = #tpu.dot_dimension_numbers<[1], [0], [0], [1], [0, 0, 1, 1], [], []>} : vector<128x32xf32>, vector<32x128xf32>, vector<128x128xf32> -> vector<128x128xf32>
    %c0_21 = arith.constant 0 : index
    %c0_22 = arith.constant 0 : index
    %29 = vector.load %arg9[%c0_21, %c0_22] : memref<1x128xf32, #tpu.memory_space<vmem>>, vector<1x128xf32>
    %30 = vector.broadcast %29 : vector<1x128xf32> to vector<128x128xf32>
    %31 = arith.addf %28, %30 : vector<128x128xf32>
    %c0_23 = arith.constant 0 : index
    %c0_24 = arith.constant 0 : index
    %32 = vector.load %arg10[%c0_23, %c0_24] : memref<128x128xf32, #tpu.memory_space<vmem>>, vector<128x128xf32>
    tpu.vector_store %arg10[%c0_23, %c0_24], %31 {strides = array<i32>} : memref<128x128xf32, #tpu.memory_space<vmem>>, vector<128x128xf32>,
    return
  }
  func.func @transform_0(%arg0: i32) -> (i32, i32) {
    %c0_i32 = arith.constant 0 : i32
    %c0_i32_0 = arith.constant 0 : i32
    return %arg0, %c0_i32 : i32, i32
  }
  func.func @transform_1(%arg0: i32) -> (i32, i32) {
    %c0_i32 = arith.constant 0 : i32
    %c0_i32_0 = arith.constant 0 : i32
    return %arg0, %c0_i32 : i32, i32
  }
  func.func @transform_2(%arg0: i32) -> (i32, i32) {
    %c0_i32 = arith.constant 0 : i32
    %c0_i32_0 = arith.constant 0 : i32
    %c0_i32_1 = arith.constant 0 : i32
    return %c0_i32, %c0_i32_0 : i32, i32
  }
  func.func @transform_3(%arg0: i32) -> (i32, i32) {
    %c0_i32 = arith.constant 0 : i32
    %c0_i32_0 = arith.constant 0 : i32
    %c0_i32_1 = arith.constant 0 : i32
    return %c0_i32, %c0_i32_0 : i32, i32
  }
  func.func @transform_4(%arg0: i32) -> (i32, i32) {
    %c0_i32 = arith.constant 0 : i32
    %c0_i32_0 = arith.constant 0 : i32
    %c0_i32_1 = arith.constant 0 : i32
    return %c0_i32, %c0_i32_0 : i32, i32
  }
  func.func @transform_5(%arg0: i32) -> (i32, i32) {
    %c0_i32 = arith.constant 0 : i32
    %c0_i32_0 = arith.constant 0 : i32
    %c0_i32_1 = arith.constant 0 : i32
    return %c0_i32, %c0_i32_0 : i32, i32
  }
  func.func @transform_6(%arg0: i32) -> (i32, i32) {
    %c0_i32 = arith.constant 0 : i32
    %c0_i32_0 = arith.constant 0 : i32
    %c0_i32_1 = arith.constant 0 : i32
    return %c0_i32, %c0_i32_0 : i32, i32
  }
  func.func @transform_7(%arg0: i32) -> (i32, i32) {
    %c0_i32 = arith.constant 0 : i32
    %c0_i32_0 = arith.constant 0 : i32
    %c0_i32_1 = arith.constant 0 : i32
    return %c0_i32, %c0_i32_0 : i32, i32
  }
  func.func @transform_8(%arg0: i32) -> (i32, i32) {
    %c0_i32 = arith.constant 0 : i32
    %c0_i32_0 = arith.constant 0 : i32
    %c0_i32_1 = arith.constant 0 : i32
    return %c0_i32, %c0_i32_0 : i32, i32
  }
  func.func @transform_9(%arg0: i32) -> (i32, i32) {
    %c0_i32 = arith.constant 0 : i32
    %c0_i32_0 = arith.constant 0 : i32
    return %arg0, %c0_i32 : i32, i32
  }
}

</mosaic_0001>

<bundles_post_ra>
// kernel: tpu_custom_call.1
= control target key start
LH: loop header
LB: loop body
LE: loop exit
PB: predicated region body
PF: predicated region fallthrough
CT: control target
= control target key end

     0   :  { %14 = vsyncpa [#allocation3], 0  ;;  %s2888_s0 = inlined_call_operand.vmem [shape: f32[256,9], index: 0, kind: input, shape index: {}]   ;;  %s2889_s1 = inlined_call_operand.vmem [shape: f32[256,25], index: 1, kind: input, shape index: {}]   ;;  %s2890_s2 = inlined_call_operand.vmem [shape: f32[9,32], index: 2, kind: input, shape index: {}]   ;;  %s2891_s3 = inlined_call_operand.vmem [shape: f32[32,16], index: 3, kind: input, shape index: {}]   ;;  %s2892_s4 = inlined_call_operand.vmem [shape: f32[1,16], index: 4, kind: input, shape index: {}]   ;;  %s2893_s5 = inlined_call_operand.vmem [shape: f32[16,32], index: 5, kind: input, shape index: {}]   ;;  %s2894_s6 = inlined_call_operand.vmem [shape: f32[25,32], index: 6, kind: input, shape index: {}]   ;;  %s2895_s7 = inlined_call_operand.vmem [shape: f32[32,128], index: 7, kind: input, shape index: {}]   ;;  %s2896_s8 = inlined_call_operand.vmem [shape: f32[1,128], index: 8, kind: input, shape index: {}]   ;;  %s2897_s9 = inlined_call_operand.hbm [shape: f32[256,128], index: 9, kind: output, shape index: {}]  }
   0x1   :  { %16 = vsyncpa [#allocation3 + $0x1], 0  ;;  %s2491_s30 = smov 0   ;;  %s2493_s10 = smov 0  }
   0x2   :  { %s2495_s11 = smov 0   ;;  %s2497_s12 = smov 0  }
   0x3 LB: > { %s2512_s13 = sadd.s32 4294967295, %s2435_s12   ;;  %s1738_s14 = sadd.s32 4294967294, %s2435_s12   ;;  %s2435_s12 = sphi %s2497_s12, %s2905_s12   ;;  %s2431_s11 = sphi %s2495_s11, %s2904_s11   ;;  %s2427_s10 = sphi %s2493_s10, %s2903_s10   ;;  %s2423_s30 = sphi %s2491_s30, %s2902_s30  }
   0x4   : > { %s2516_s15 = sadd.s32 1, %s2435_s12   ;;  %s228_s16 = sadd.s32 1, %s2431_s11 }
   0x5   : > { %s225_s17 = ssub.s32 %s2435_s12, %s2516_s15  ;;  %p238_p0 = scmp.ne.s32.totalorder %s2431_s11, %s2427_s10 }
   0x6   : > { %p226_p1 = scmp.eq.s32.totalorder %s225_s17, 0  ;;  %p239_p2 = scmp.eq.s32.totalorder %s2512_s13, 1 }
   0x7   : > { %p244_p3 = scmp.ne.s32.totalorder %s2427_s10, %s2423_s30  ;;  %p245_p4 = scmp.eq.s32.totalorder %s1738_s14, 1 }
   0x8   : > { %s2527_s18 = scalar_select %p226_p1, %s2431_s11, %s228_s16  }
   0x9   : > { %p2529_p5 = por %p239_p2, %p238_p0  ;;  %p2533_p6 = por %p245_p4, %p244_p3 }
   0xa   : > { %p1741_p7 = scmp.ge.s32.totalorder %s2435_s12, 1  ;;  %p302_p8 = scmp.lt.s32.totalorder %s2435_s12, 3 }
   0xc   : > { %p303_p9 = pnand %p1741_p7, %p302_p8 }
   0xd   : > { %v372_v0 = vld [vmem:[%s2890_s2] sm:$0xff] (!%p303_p9)  ;;  %v373_v1 = vld [vmem:[%s2890_s2 + $0x8] sm:$0x1] (!%p303_p9)  ;;  %vm423_vm0 = vcmask (!%p303_p9), 1040384   ;;  %s1743_s25 = sshll.u32 (!%p303_p9), %s2512_s13, 4  ;;  %vm2437_vm1 = vmmov (!%p303_p9), 1  }
   0xe   : > { %306 = sbr.rel (%p303_p9) target bundleno = 1009 (0x3f1), region = 56  ;;  %v2117_v2 = vpack.c.bf16 (!%p303_p9), %v373_v1, %v372_v0  ;;  %vm2546_vm2 = vmpackc.low (!%p303_p9), %vm423_vm0, %vm2437_vm1  ;;  %p344_p10 = scmp.lt.s32.totalorder (!%p303_p9), %s1743_s25, 31  ;;  %vm374_vm3 = vcmask (!%p303_p9), 72704   ;;  %v684_v20 = vld [vmem:[%s2891_s3] sm:$0xff] (!%p303_p9)  ;;  %v685_v21 = vld [vmem:[%s2891_s3 + $0x8] sm:$0xff] (!%p303_p9)  ;;  %vm927_vm4 = vcmask (!%p303_p9), 203776  }
   0xf   : > { %v2123_v22 = vpack.c.bf16 (!%p303_p9), %v685_v21, %v684_v20  ;;  %v686_v23 = vld [vmem:[%s2891_s3 + $0x10] sm:$0xff] (!%p303_p9)  ;;  %v687_v24 = vld [vmem:[%s2891_s3 + $0x18] sm:$0xff] (!%p303_p9)  ;;  %v923_v26 = vld [vmem:[%s2894_s6] sm:$0xff] (!%p303_p9)  ;;  %vm695_vm5 = vcmask (!%p303_p9), 261120   ;;  %vm1124_vm6 = vcmask (!%p303_p9), 130048   ;;  %s1868_s23 = sshll.u32 (!%p303_p9), %s2512_s13, 11 }
  0x10   : > { %2119 = vmatprep.subr.msk.bf16.mxu0 (!%p303_p9), %vm2546_vm2, %v2117_v2  ;;  %2153 = vmatprep.subr.msk.bf16.mxu1 (!%p303_p9), %vm2546_vm2, %v2117_v2  ;;  %v2127_v25 = vpack.c.bf16 (!%p303_p9), %v687_v24, %v686_v23  ;;  %v924_v27 = vld [vmem:[%s2894_s6 + $0x8] sm:$0xff] (!%p303_p9)  ;;  %v925_v28 = vld [vmem:[%s2894_s6 + $0x10] sm:$0xff] (!%p303_p9)  ;;  %v926_v30 = vld [vmem:[%s2894_s6 + $0x18] sm:$0x1] (!%p303_p9)  ;;  %s2438_s28 = smov (!%p303_p9), [#allocation2]  }
  0x11   : > { %2122 = vmatpush3.bf16.msk.msra.mxu0 (!%p303_p9), %vm2546_vm2, %v2117_v2  ;;  %2154 = vmatpush3.bf16.msk.msra.mxu1 (!%p303_p9), %vm2546_vm2, %v2117_v2  ;;  %v2131_v29 = vpack.c.bf16 (!%p303_p9), %v924_v27, %v923_v26  ;;  %v2135_v32 = vpack.c.bf16 (!%p303_p9), %v926_v30, %v925_v28  ;;  %v905_v33 = vld [vmem:[%s2893_s5] sm:$0xff] (!%p303_p9)  ;;  %v906_v34 = vld [vmem:[%s2893_s5 + $0x8] sm:$0xff] (!%p303_p9) }
  0x12   : > { %2124 = vmatprep.subr.bf16.mxu1 (!%p303_p9), %v2123_v22  ;;  %v2141_v35 = vpack.c.bf16 (!%p303_p9), %v906_v34, %v905_v33 }
  0x13   : > { %2132 = vmatprep.subr.bf16.mxu0 (!%p303_p9), %v2131_v29 }
  0x15   : > { %s2907_s25 = smov (!%p344_p10, %s1743_s25), 31 }
  0x16   : > { %s1744_s26 = sshll.u32 %s2907_s25, 3 }
  0x17   : > { %s347_s29 = scalar_lea.vmem %s2888_s0, %s1744_s26  ;;  %s2599_s14 = scalar_lea.vmem %s2889_s1, %s1744_s26 }
  0x18   : > { %v356_v4 = vld [vmem:[%s347_s29] sm:$0xff]  ;;  %v357_v6 = vld [vmem:[%s347_s29 + $0x8] sm:$0xff]  ;;  %v358_v8 = vld [vmem:[%s347_s29 + $0x10] sm:$0xff]  ;;  %s2839_s26 = scalar_lea.hbm %s2897_s9, %s1868_s23 }
  0x19   : > { %v364_v5 = vld [vmem:[%s347_s29 + $0x40] sm:$0xff]  ;;  %1969 = vmatprep.mubr.msk.f32.mxu0 %vm374_vm3, %v356_v4  ;;  %v365_v7 = vld [vmem:[%s347_s29 + $0x48] sm:$0xff]  ;;  %v366_v9 = vld [vmem:[%s347_s29 + $0x50] sm:$0xff] }
  0x1a   : > { %1981 = vmatprep.mubr.msk.f32.mxu1 %vm374_vm3, %v364_v5  ;;  %1970 = vmatmul.mubr.msk.f32.vlgmr.msra.gmra.mrb[0].mxu0 %vm374_vm3, %v357_v6  ;;  %v359_v10 = vld [vmem:[%s347_s29 + $0x18] sm:$0xff]  ;;  %v360_v12 = vld [vmem:[%s347_s29 + $0x20] sm:$0xff]  ;;  %v361_v14 = vld [vmem:[%s347_s29 + $0x28] sm:$0xff] }
  0x1b   : > { %1982 = vmatmul.mubr.msk.f32.vlgmr.msra.gmra.mrb[0].mxu1 %vm374_vm3, %v365_v7  ;;  %1972 = vmatprep.mubr.msk.f32.mxu0 %vm374_vm3, %v358_v8  ;;  %v367_v11 = vld [vmem:[%s347_s29 + $0x58] sm:$0xff]  ;;  %v368_v13 = vld [vmem:[%s347_s29 + $0x60] sm:$0xff]  ;;  %v369_v15 = vld [vmem:[%s347_s29 + $0x68] sm:$0xff] }
  0x1c   : > { %1984 = vmatprep.mubr.msk.f32.mxu1 %vm374_vm3, %v366_v9  ;;  %v362_v16 = vld [vmem:[%s347_s29 + $0x30] sm:$0xff]  ;;  %v363_v18 = vld [vmem:[%s347_s29 + $0x38] sm:$0xff]  ;;  %2126 = vmatpush3.bf16.msra.mxu1 %v2123_v22  ;;  %v907_v31 = vld [vmem:[%s2599_s14] sm:$0xff] }
  0x1d   : > { %v370_v17 = vld [vmem:[%s347_s29 + $0x70] sm:$0xff]  ;;  %v371_v19 = vld [vmem:[%s347_s29 + $0x78] sm:$0xff]  ;;  %2128 = vmatprep.subr.bf16.mxu1 %v2127_v25  ;;  %2134 = vmatpush3.bf16.msra.mxu0 %v2131_v29  ;;  %v908_v36 = vld [vmem:[%s2599_s14 + $0x8] sm:$0xff]  ;;  %s340_s29 = sand.u32 1, %s2427_s10  }
  0x1e   : > { %1973 = vmatmul.mubr.msk.f32.gmra.mrb[2].mxu0 %vm374_vm3, %v359_v10  ;;  %2137 = vmatprep.subr.msk.bf16.mxu0 %vm2546_vm2, %v2135_v32  ;;  %v909_v37 = vld [vmem:[%s2599_s14 + $0x10] sm:$0xff]  ;;  %v910_v38 = vld [vmem:[%s2599_s14 + $0x18] sm:$0xff]  ;;  %v911_v39 = vld [vmem:[%s2599_s14 + $0x20] sm:$0xff]  ;;  %s1742_s16 = sshll.u32 %s340_s29, 7  ;;  %s2847_s13 = scalar_lea.sflag [#allocation3], %s340_s29 }
  0x1f   : > { %1985 = vmatmul.mubr.msk.f32.gmra.mrb[2].mxu1 %vm374_vm3, %v367_v11  ;;  %1975 = vmatprep.mubr.msk.f32.mxu0 %vm374_vm3, %v360_v12  ;;  %v912_v40 = vld [vmem:[%s2599_s14 + $0x28] sm:$0xff]  ;;  %v913_v41 = vld [vmem:[%s2599_s14 + $0x30] sm:$0xff]  ;;  %v914_v42 = vld [vmem:[%s2599_s14 + $0x38] sm:$0xff]  ;;  %s2818_s22 = scalar_lea.vmem [#allocation2], %s1742_s16  ;;  %s2377_s16 = sshll.u32 %s2438_s28, 4  ;;  %s2378_s16 = int_to_ptr.vmem [resolvable:$false] %s2377_s16 }
  0x20   : > { %1987 = vmatprep.mubr.msk.f32.mxu1 %vm374_vm3, %v368_v13  ;;  %2130 = vmatpush3.bf16.msra.mxu1 %v2127_v25  ;;  %v915_v43 = vld [vmem:[%s2599_s14 + $0x40] sm:$0xff]  ;;  %s1664_s24 = sshll.u32 %s2818_s22, 4  ;;  %s2379_s17 = scalar_lea.vmem %s2378_s16, 4096  ;;  %s2841_s24 = int_to_ptr.vmem [resolvable:$true] %s1664_s24 }
  0x21   : > { %2140 = vmatpush3.bf16.msk.msra.mxu0 %vm2546_vm2, %v2135_v32  ;;  %s2373_s27 = scalar_lea.vmem %s2841_s24, 2048  ;;  %p2380_p0 = scmp.lt.s32.totalorder %s2841_s24, %s2378_s16 }
  0x22   : > { %1976 = vmatmul.mubr.msk.f32.gmra.mrb[4].mxu0 %vm374_vm3, %v361_v14  ;;  %2142 = vmatprep.subr.bf16.mxu0 %v2141_v35  ;;  %p2374_p11 = scmp.ne.s32.totalorder %s2841_s24, %s2373_s27  ;;  %p2381_p1 = scmp.lt.s32.totalorder %s2379_s17, %s2373_s27 }
  0x23   : > { %1988 = vmatmul.mubr.msk.f32.gmra.mrb[4].mxu1 %vm374_vm3, %v369_v15  ;;  %1978 = vmatprep.mubr.msk.f32.mxu0 %vm374_vm3, %v362_v16 }
  0x24   : > { %1990 = vmatprep.mubr.msk.f32.mxu1 %vm374_vm3, %v370_v17  ;;  %p2375_p12 = pnand %p2374_p11, %p2529_p5  ;;  %p2382_p2 = por %p2381_p1, %p2380_p0 }
  0x26   : > { %1979 = vmatmul.mubr.msk.f32.gmra.mrb[6].mxu0 %vm374_vm3, %v363_v18  ;;  %p2376_p13 = pneg %p2375_p12 }
  0x27   : > { %1991 = vmatmul.mubr.msk.f32.gmra.mrb[6].mxu1 %vm374_vm3, %v371_v19  ;;  %2033 = vmatprep.mubr.msk.f32.mxu0 %vm927_vm4, %v907_v31 }
  0x28   : > { %p2383_p3 = pnand %p2382_p2, %p2376_p13 }
  0x2a   : > { %2034 = vmatmul.mubr.msk.f32.vlgmr.msra.gmra.mrb[8].mxu0 %vm927_vm4, %v908_v36 }
  0x2b   : > { %2144 = vmatpush3.bf16.msra.mxu0 %v2141_v35  ;;  %2036 = vmatprep.mubr.msk.f32.mxu0 %vm927_vm4, %v909_v37 }
  0x2e   : > { %2037 = vmatmul.mubr.msk.f32.gmra.mrb[10].mxu0 %vm927_vm4, %v910_v38 }
  0x2f   : > { %2039 = vmatprep.mubr.msk.f32.mxu0 %vm927_vm4, %v911_v39 }
  0x32   : > { %2040 = vmatmul.mubr.msk.f32.gmra.mrb[12].mxu0 %vm927_vm4, %v912_v40 }
  0x33   : > { %2042 = vmatprep.mubr.msk.f32.mxu0 %vm927_vm4, %v913_v41 }
  0x36   : > { %2043 = vmatmul.mubr.msk.f32.gmra.mrb[14].mxu0 %vm927_vm4, %v914_v42 }
  0x37   : > { %2045 = vmatprep.mubr.msk.f32.mxu0 %vm927_vm4, %v915_v43 }
  0xed   : > { %v1971_v44 = vpop.f32.mrb[0].mxu0 }
  0xee   : > { %v2641_v45 = vpop.f32.mrb[0].mxu1  ;;  %v1765_v46 = vmul.f32 -1.442695, %v1971_v44  ;;  %v493_v47 = vpop.f32.mrb[1].mxu0 }
  0xef   : > { %v2643_v48 = vpop.f32.mrb[1].mxu1  ;;  %v1764_v49 = vmul.f32 -1.442695, %v493_v47  ;;  %v1773_v15 = vmul.f32 -1.442695, %v2641_v45 }
  0xf0   : > { %2213 = vpow2.f32 %v1765_v46  ;;  %v1772_v9 = vmul.f32 -1.442695, %v2643_v48 }
  0xf1   : > { %v2645_v50 = vpop.f32.mrb[2].mxu0  ;;  %2215 = vpow2.f32 %v1764_v49 }
  0xf2   : > { %v2647_v51 = vpop.f32.mrb[2].mxu1  ;;  %v1767_v52 = vmul.f32 -1.442695, %v2645_v50  ;;  %v503_v53 = vpop.f32.mrb[3].mxu0 }
  0xf3   : > { %v2650_v54 = vpop.f32.mrb[3].mxu1  ;;  %v1766_v55 = vmul.f32 -1.442695, %v503_v53  ;;  %v1775_v22 = vmul.f32 -1.442695, %v2647_v51 }
  0xf4   : > { %2217 = vpow2.f32 %v1767_v52  ;;  %v1774_v17 = vmul.f32 -1.442695, %v2650_v54 }
  0xf5   : > { %v2652_v56 = vpop.f32.mrb[4].mxu0  ;;  %2219 = vpow2.f32 %v1766_v55 }
  0xf6   : > { %v2654_v57 = vpop.f32.mrb[4].mxu1  ;;  %v1769_v58 = vmul.f32 -1.442695, %v2652_v56  ;;  %v513_v59 = vpop.f32.mrb[5].mxu0 }
  0xf7   : > { %v2657_v60 = vpop.f32.mrb[5].mxu1  ;;  %v1768_v61 = vmul.f32 -1.442695, %v513_v59  ;;  %v1777_v29 = vmul.f32 -1.442695, %v2654_v57 }
  0xf8   : > { %2221 = vpow2.f32 %v1769_v58  ;;  %v1776_v24 = vmul.f32 -1.442695, %v2657_v60 }
  0xf9   : > { %v2659_v62 = vpop.f32.mrb[6].mxu0  ;;  %2223 = vpow2.f32 %v1768_v61 }
  0xfa   : > { %v2661_v63 = vpop.f32.mrb[6].mxu1  ;;  %v2214_v0 = vpop.eup %2213  ;;  %v1771_v11 = vmul.f32 -1.442695, %v2659_v62 }
  0xfb   : > { %v2663_v1 = vpop.f32.mrb[7].mxu0  ;;  %v2665_v2 = vpop.f32.mrb[7].mxu1  ;;  %v621_v3 = vadd.f32 1.0, %v2214_v0  ;;  %v1779_v37 = vmul.f32 -1.442695, %v2661_v63 }
  0xfc   : > { %v2216_v4 = vpop.eup %2215  ;;  %v1770_v18 = vmul.f32 -1.442695, %v2663_v1  ;;  %v1778_v32 = vmul.f32 -1.442695, %v2665_v2 }
  0xfd   : > { %v620_v5 = vadd.f32 1.0, %v2216_v4  ;;  %2225 = vrcp.f32 %v621_v3 }
  0xfe   : > { %v2218_v6 = vpop.eup %2217 }
  0xff   : > { %2227 = vrcp.f32 %v620_v5  ;;  %v623_v7 = vadd.f32 1.0, %v2218_v6  ;;  %v2220_v8 = vpop.eup %2219 }
 0x100   : > { %v622_v10 = vadd.f32 1.0, %v2220_v8 }
 0x101   : > { %2229 = vrcp.f32 %v623_v7 }
 0x102   : > { %v2222_v12 = vpop.eup %2221  ;;  %2231 = vrcp.f32 %v622_v10 }
 0x103   : > { %v625_v13 = vadd.f32 1.0, %v2222_v12  ;;  %v2224_v14 = vpop.eup %2223  ;;  %2233 = vpow2.f32 %v1772_v9 }
 0x104   : > { %v624_v16 = vadd.f32 1.0, %v2224_v14  ;;  %2235 = vpow2.f32 %v1771_v11 }
 0x105   : > { %2237 = vrcp.f32 %v625_v13 }
 0x106   : > { %2239 = vrcp.f32 %v624_v16  ;;  %v917_v16 = vld [vmem:[%s2599_s14 + $0x50] sm:$0xff] }
 0x107   : > { %v2226_v19 = vpop.eup %2225  ;;  %2241 = vpow2.f32 %v1773_v15 }
 0x108   : > { %2243 = vpow2.f32 %v1774_v17  ;;  %v669_v23 = vmul.f32 %v2226_v19, %v1971_v44  ;;  %v919_v17 = vld [vmem:[%s2599_s14 + $0x60] sm:$0xff] }
 0x109   : > { %v2228_v20 = vpop.eup %2227  ;;  %2245 = vpow2.f32 %v1770_v18  ;;  %v921_v18 = vld [vmem:[%s2599_s14 + $0x70] sm:$0xff]  ;;  %v1430_v19 = vld [vmem:[%s2895_s7] sm:$0xff] }
 0x10a   : > { %v668_v21 = vmul.f32 %v2228_v20, %v493_v47  ;;  %2247 = vpow2.f32 %v1775_v22  ;;  %v1431_v20 = vld [vmem:[%s2895_s7 + $0x8] sm:$0xff]  ;;  %v2728_v22 = vld [vmem:[%s2892_s4] ss:$0 sm:$0xff] }
 0x10b   : > { %v2230_v25 = vpop.eup %2229  ;;  %2249 = vpow2.f32 %v1776_v24 }
 0x10c   : > { %2001 = vmatprep.mubr.msk.f32.mxu1 %vm695_vm5, %v668_v21  ;;  %v2232_v26 = vpop.eup %2231  ;;  %v671_v31 = vmul.f32 %v2230_v25, %v2645_v50  ;;  %2251 = vpow2.f32 %v1777_v29  ;;  %v2145_v21 = vpack.c.bf16 %v1431_v20, %v1430_v19 }
 0x10d   : > { %2002 = vmatmul.mubr.msk.f32.vlgmr.msra.gmra.mrb[8].mxu1 %vm695_vm5, %v669_v23  ;;  %v2234_v27 = vpop.eup %2233  ;;  %v670_v28 = vmul.f32 %v2232_v26, %v503_v53  ;;  %2253 = vpow2.f32 %v1778_v32 }
 0x10e   : > { %v2236_v30 = vpop.eup %2235  ;;  %v628_v35 = vadd.f32 1.0, %v2234_v27  ;;  %2146 = vmatprep.subr.bf16.mxu1 %v2145_v21 }
 0x10f   : > { %v2238_v33 = vpop.eup %2237  ;;  %2004 = vmatprep.mubr.msk.f32.mxu1 %vm695_vm5, %v670_v28  ;;  %v627_v40 = vadd.f32 1.0, %v2236_v30  ;;  %2148 = vmatpush3.bf16.msra.mxu1 %v2145_v21 }
 0x110   : > { %v2240_v34 = vpop.eup %2239  ;;  %v673_v39 = vmul.f32 %v2238_v33, %v2652_v56  ;;  %2255 = vrcp.f32 %v628_v35 }
 0x111   : > { %2005 = vmatmul.mubr.msk.f32.gmra.mrb[10].mxu1 %vm695_vm5, %v671_v31  ;;  %v672_v36 = vmul.f32 %v2240_v34, %v513_v59  ;;  %v2242_v38 = vpop.eup %2241  ;;  %2257 = vpow2.f32 %v1779_v37 }
 0x112   : > { %v2244_v41 = vpop.eup %2243  ;;  %v629_v44 = vadd.f32 1.0, %v2242_v38  ;;  %2259 = vrcp.f32 %v627_v40 }
 0x113   : > { %2007 = vmatprep.mubr.msk.f32.mxu1 %vm695_vm5, %v672_v36  ;;  %v2246_v42 = vpop.eup %2245  ;;  %v630_v47 = vadd.f32 1.0, %v2244_v41 }
 0x114   : > { %v626_v43 = vadd.f32 1.0, %v2246_v42  ;;  %v2248_v46 = vpop.eup %2247 }
 0x115   : > { %2008 = vmatmul.mubr.msk.f32.gmra.mrb[12].mxu1 %vm695_vm5, %v673_v39  ;;  %v2250_v49 = vpop.eup %2249  ;;  %v631_v50 = vadd.f32 1.0, %v2248_v46 }
 0x116   : > { %2261 = vrcp.f32 %v626_v43  ;;  %v2252_v52 = vpop.eup %2251  ;;  %v632_v53 = vadd.f32 1.0, %v2250_v49 }
 0x117   : > { %2263 = vrcp.f32 %v629_v44  ;;  %v2254_v55 = vpop.eup %2253  ;;  %v633_v58 = vadd.f32 1.0, %v2252_v52 }
 0x118   : > { %2265 = vrcp.f32 %v630_v47  ;;  %v634_v61 = vadd.f32 1.0, %v2254_v55 }
 0x119   : > { %2267 = vrcp.f32 %v631_v50 }
 0x11a   : > { %v2256_v56 = vpop.eup %2255  ;;  %2269 = vrcp.f32 %v632_v53 }
 0x11b   : > { %v2258_v59 = vpop.eup %2257  ;;  %2271 = vrcp.f32 %v633_v58  ;;  %v676_v8 = vmul.f32 %v2256_v56, %v2643_v48 }
 0x11c   : > { %v2260_v0 = vpop.eup %2259  ;;  %v635_v4 = vadd.f32 1.0, %v2258_v59  ;;  %2273 = vrcp.f32 %v634_v61 }
 0x11d   : > { %v675_v6 = vmul.f32 %v2260_v0, %v2659_v62 }
 0x11e   : > { %2275 = vrcp.f32 %v635_v4 }
 0x120   : > { %v2262_v3 = vpop.eup %2261 }
 0x121   : > { %v674_v5 = vmul.f32 %v2262_v3, %v2663_v1  ;;  %v2264_v7 = vpop.eup %2263 }
 0x122   : > { %v2266_v9 = vpop.eup %2265  ;;  %v677_v10 = vmul.f32 %v2264_v7, %v2641_v45 }
 0x123   : > { %2010 = vmatprep.mubr.msk.f32.mxu1 %vm695_vm5, %v674_v5  ;;  %v2268_v11 = vpop.eup %2267  ;;  %v678_v12 = vmul.f32 %v2266_v9, %v2650_v54 }
 0x124   : > { %2011 = vmatmul.mubr.msk.f32.gmra.mrb[14].mxu1 %vm695_vm5, %v675_v6  ;;  %v2270_v1 = vpop.eup %2269  ;;  %v679_v48 = vmul.f32 %v2268_v11, %v2647_v51 }
 0x125   : > { %2013 = vmatprep.mubr.msk.f32.mxu1 %vm695_vm5, %v676_v8  ;;  %v2272_v62 = vpop.eup %2271  ;;  %v680_v13 = vmul.f32 %v2270_v1, %v2657_v60  ;;  %v916_v60 = vld [vmem:[%s2599_s14 + $0x48] sm:$0xff] }
 0x126   : > { %v2274_v14 = vpop.eup %2273  ;;  %v681_v45 = vmul.f32 %v2272_v62, %v2654_v57  ;;  %2046 = vmatmul.mubr.msk.f32.gmra.mrb[16].mxu0 %vm927_vm4, %v916_v60  ;;  %v918_v57 = vld [vmem:[%s2599_s14 + $0x58] sm:$0xff] }
 0x127   : > { %v682_v15 = vmul.f32 %v2274_v14, %v2665_v2  ;;  %2048 = vmatprep.mubr.msk.f32.mxu0 %vm927_vm4, %v917_v16  ;;  %v920_v2 = vld [vmem:[%s2599_s14 + $0x68] sm:$0xff]  ;;  %v1432_v14 = vld [vmem:[%s2895_s7 + $0x10] sm:$0xff] }
 0x128   : > { %2014 = vmatmul.mubr.msk.f32.gmra.mrb[16].mxu1 %vm695_vm5, %v677_v10  ;;  %v2276_v54 = vpop.eup %2275 }
 0x129   : > { %2016 = vmatprep.mubr.msk.f32.mxu1 %vm695_vm5, %v678_v12  ;;  %v683_v51 = vmul.f32 %v2276_v54, %v2661_v63  ;;  %v922_v63 = vld [vmem:[%s2599_s14 + $0x78] sm:$0xff] }
 0x12a   : > { %2049 = vmatmul.mubr.msk.f32.gmra.mrb[18].mxu0 %vm927_vm4, %v918_v57 }
 0x12b   : > { %2051 = vmatprep.mubr.msk.f32.mxu0 %vm927_vm4, %v919_v17 }
 0x12c   : > { %2017 = vmatmul.mubr.msk.f32.gmra.mrb[18].mxu1 %vm695_vm5, %v679_v48 }
 0x12d   : > { %2019 = vmatprep.mubr.msk.f32.mxu1 %vm695_vm5, %v680_v13 }
 0x12e   : > { %2052 = vmatmul.mubr.msk.f32.gmra.mrb[20].mxu0 %vm927_vm4, %v920_v2 }
 0x12f   : > { %2054 = vmatprep.mubr.msk.f32.mxu0 %vm927_vm4, %v921_v18 }
 0x130   : > { %2020 = vmatmul.mubr.msk.f32.gmra.mrb[20].mxu1 %vm695_vm5, %v681_v45  ;;  %v1433_v45 = vld [vmem:[%s2895_s7 + $0x18] sm:$0xff] }
 0x131   : > { %2022 = vmatprep.mubr.msk.f32.mxu1 %vm695_vm5, %v682_v15  ;;  %v2149_v54 = vpack.c.bf16 %v1433_v45, %v1432_v14 }
 0x132   : > { %2055 = vmatmul.mubr.msk.f32.gmra.mrb[22].mxu0 %vm927_vm4, %v922_v63 }
 0x133   : > { %2150 = vmatprep.subr.bf16.mxu1 %v2149_v54 }
 0x134   : > { %2023 = vmatmul.mubr.msk.f32.gmra.mrb[22].mxu1 %vm695_vm5, %v683_v51 }
 0x135   : > { %2152 = vmatpush3.bf16.msra.mxu1 %v2149_v54 }
 0x1e0   : > { %v2003_v23 = vpop.f32.mrb[8].mxu1 }
 0x1e1   : > { %v816_v24 = vadd.f32 %v2003_v23, %v2728_v22  ;;  %v810_v25 = vpop.f32.mrb[9].mxu1 }
 0x1e2   : > { %v811_v26 = vadd.f32 %v2728_v22, %v810_v25 }
 0x1e4   : > { %2277 = vtanh.f32 %v811_v26  ;;  %v2006_v27 = vpop.f32.mrb[10].mxu1 }
 0x1e5   : > { %2279 = vtanh.f32 %v816_v24  ;;  %v826_v28 = vadd.f32 %v2006_v27, %v2728_v22  ;;  %v820_v29 = vpop.f32.mrb[11].mxu1 }
 0x1e6   : > { %v821_v30 = vadd.f32 %v2728_v22, %v820_v29 }
 0x1e8   : > { %2281 = vtanh.f32 %v821_v30  ;;  %v2009_v31 = vpop.f32.mrb[12].mxu1 }
 0x1e9   : > { %2283 = vtanh.f32 %v826_v28  ;;  %v836_v32 = vadd.f32 %v2009_v31, %v2728_v22  ;;  %v830_v33 = vpop.f32.mrb[13].mxu1 }
 0x1ea   : > { %v831_v34 = vadd.f32 %v2728_v22, %v830_v33 }
 0x1ec   : > { %2285 = vtanh.f32 %v831_v34 }
 0x1ed   : > { %2287 = vtanh.f32 %v836_v32 }
 0x1ee   : > { %v2278_v35 = vpop.eup %2277 }
 0x1ef   : > { %v2280_v36 = vpop.eup %2279  ;;  %2061 = vmatprep.mubr.msk.f32.mxu0 %vm1124_vm6, %v2278_v35 }
 0x1f0   : > { %2062 = vmatmul.mubr.msk.f32.vlgmr.msra.gmra.mrb[8].mxu0 %vm1124_vm6, %v2280_v36 }
 0x1f2   : > { %v2282_v37 = vpop.eup %2281 }
 0x1f3   : > { %v2284_v38 = vpop.eup %2283  ;;  %2064 = vmatprep.mubr.msk.f32.mxu0 %vm1124_vm6, %v2282_v37 }
 0x1f4   : > { %2065 = vmatmul.mubr.msk.f32.gmra.mrb[10].mxu0 %vm1124_vm6, %v2284_v38 }
 0x1f6   : > { %v2286_v39 = vpop.eup %2285 }
 0x1f7   : > { %v2288_v40 = vpop.eup %2287  ;;  %2067 = vmatprep.mubr.msk.f32.mxu0 %vm1124_vm6, %v2286_v39  ;;  %v2012_v41 = vpop.f32.mrb[14].mxu1 }
 0x1f8   : > { %2068 = vmatmul.mubr.msk.f32.gmra.mrb[12].mxu0 %vm1124_vm6, %v2288_v40  ;;  %v846_v42 = vadd.f32 %v2012_v41, %v2728_v22  ;;  %v840_v43 = vpop.f32.mrb[15].mxu1 }
 0x1f9   : > { %v841_v44 = vadd.f32 %v2728_v22, %v840_v43 }
 0x1fb   : > { %2289 = vtanh.f32 %v841_v44  ;;  %v2015_v46 = vpop.f32.mrb[16].mxu1 }
 0x1fc   : > { %2291 = vtanh.f32 %v846_v42  ;;  %v856_v47 = vadd.f32 %v2015_v46, %v2728_v22  ;;  %v850_v49 = vpop.f32.mrb[17].mxu1 }
 0x1fd   : > { %v851_v50 = vadd.f32 %v2728_v22, %v850_v49 }
 0x1ff   : > { %2293 = vtanh.f32 %v851_v50  ;;  %v2018_v52 = vpop.f32.mrb[18].mxu1 }
 0x200   : > { %2295 = vtanh.f32 %v856_v47  ;;  %v866_v53 = vadd.f32 %v2018_v52, %v2728_v22  ;;  %v860_v55 = vpop.f32.mrb[19].mxu1 }
 0x201   : > { %v861_v56 = vadd.f32 %v2728_v22, %v860_v55 }
 0x203   : > { %2297 = vtanh.f32 %v861_v56  ;;  %v2021_v58 = vpop.f32.mrb[20].mxu1 }
 0x204   : > { %2299 = vtanh.f32 %v866_v53  ;;  %v876_v59 = vadd.f32 %v2021_v58, %v2728_v22  ;;  %v870_v61 = vpop.f32.mrb[21].mxu1 }
 0x205   : > { %v2290_v0 = vpop.eup %2289  ;;  %v871_v3 = vadd.f32 %v2728_v22, %v870_v61 }
 0x206   : > { %v2292_v4 = vpop.eup %2291  ;;  %2070 = vmatprep.mubr.msk.f32.mxu0 %vm1124_vm6, %v2290_v0 }
 0x207   : > { %2301 = vtanh.f32 %v871_v3  ;;  %v2024_v5 = vpop.f32.mrb[22].mxu1  ;;  %2071 = vmatmul.mubr.msk.f32.gmra.mrb[14].mxu0 %vm1124_vm6, %v2292_v4 }
 0x208   : > { %2303 = vtanh.f32 %v876_v59  ;;  %v886_v6 = vadd.f32 %v2024_v5, %v2728_v22  ;;  %v880_v7 = vpop.f32.mrb[23].mxu1 }
 0x209   : > { %v2294_v8 = vpop.eup %2293  ;;  %v881_v9 = vadd.f32 %v2728_v22, %v880_v7 }
 0x20a   : > { %v2296_v10 = vpop.eup %2295  ;;  %2073 = vmatprep.mubr.msk.f32.mxu0 %vm1124_vm6, %v2294_v8 }
 0x20b   : > { %2305 = vtanh.f32 %v881_v9  ;;  %2074 = vmatmul.mubr.msk.f32.gmra.mrb[16].mxu0 %vm1124_vm6, %v2296_v10 }
 0x20c   : > { %2307 = vtanh.f32 %v886_v6 }
 0x20d   : > { %v2298_v11 = vpop.eup %2297 }
 0x20e   : > { %v2300_v12 = vpop.eup %2299  ;;  %2076 = vmatprep.mubr.msk.f32.mxu0 %vm1124_vm6, %v2298_v11 }
 0x20f   : > { %2077 = vmatmul.mubr.msk.f32.gmra.mrb[18].mxu0 %vm1124_vm6, %v2300_v12 }
 0x211   : > { %v2302_v1 = vpop.eup %2301 }
 0x212   : > { %v2304_v48 = vpop.eup %2303  ;;  %2079 = vmatprep.mubr.msk.f32.mxu0 %vm1124_vm6, %v2302_v1 }
 0x213   : > { %2080 = vmatmul.mubr.msk.f32.gmra.mrb[20].mxu0 %vm1124_vm6, %v2304_v48 }
 0x215   : > { %v2306_v62 = vpop.eup %2305 }
 0x216   : > { %v2308_v13 = vpop.eup %2307  ;;  %2082 = vmatprep.mubr.msk.f32.mxu0 %vm1124_vm6, %v2306_v62 }
 0x217   : > { %2083 = vmatmul.mubr.msk.f32.gmra.mrb[22].mxu0 %vm1124_vm6, %v2308_v13 }
 0x2c3   : > { %v2063_v15 = vpop.f32.mrb[8].mxu0 }
 0x2c4   : > { %v1831_v51 = vmul.f32 -1.442695, %v2063_v15  ;;  %v1239_v60 = vpop.f32.mrb[9].mxu0 }
 0x2c5   : > { %v1830_v16 = vmul.f32 -1.442695, %v1239_v60 }
 0x2c6   : > { %2309 = vpow2.f32 %v1831_v51 }
 0x2c7   : > { %2311 = vpow2.f32 %v1830_v16  ;;  %v2066_v57 = vpop.f32.mrb[10].mxu0 }
 0x2c8   : > { %v1833_v17 = vmul.f32 -1.442695, %v2066_v57  ;;  %v1249_v2 = vpop.f32.mrb[11].mxu0 }
 0x2c9   : > { %v1832_v18 = vmul.f32 -1.442695, %v1249_v2 }
 0x2ca   : > { %2313 = vpow2.f32 %v1833_v17 }
 0x2cb   : > { %2315 = vpow2.f32 %v1832_v18  ;;  %v2069_v63 = vpop.f32.mrb[12].mxu0 }
 0x2cc   : > { %v1835_v19 = vmul.f32 -1.442695, %v2069_v63  ;;  %v1259_v20 = vpop.f32.mrb[13].mxu0 }
 0x2cd   : > { %v1834_v21 = vmul.f32 -1.442695, %v1259_v20 }
 0x2ce   : > { %2317 = vpow2.f32 %v1835_v19 }
 0x2cf   : > { %2319 = vpow2.f32 %v1834_v21 }
 0x2d0   : > { %v2310_v22 = vpop.eup %2309 }
 0x2d1   : > { %v2312_v23 = vpop.eup %2311  ;;  %v1367_v24 = vadd.f32 1.0, %v2310_v22 }
 0x2d2   : > { %v1366_v25 = vadd.f32 1.0, %v2312_v23 }
 0x2d3   : > { %2321 = vrcp.f32 %v1367_v24 }
 0x2d4   : > { %v2314_v26 = vpop.eup %2313  ;;  %2323 = vrcp.f32 %v1366_v25 }
 0x2d5   : > { %v2316_v27 = vpop.eup %2315  ;;  %v1369_v28 = vadd.f32 1.0, %v2314_v26 }
 0x2d6   : > { %v1368_v29 = vadd.f32 1.0, %v2316_v27 }
 0x2d7   : > { %2325 = vrcp.f32 %v1369_v28 }
 0x2d8   : > { %v2318_v30 = vpop.eup %2317  ;;  %2327 = vrcp.f32 %v1368_v29 }
 0x2d9   : > { %v2320_v31 = vpop.eup %2319  ;;  %v1371_v32 = vadd.f32 1.0, %v2318_v30 }
 0x2da   : > { %v1370_v33 = vadd.f32 1.0, %v2320_v31  ;;  %v2768_v34 = vpop.f32.mrb[14].mxu0 }
 0x2db   : > { %2329 = vrcp.f32 %v1371_v32  ;;  %v1837_v36 = vmul.f32 -1.442695, %v2768_v34  ;;  %v2771_v37 = vpop.f32.mrb[15].mxu0 }
 0x2dc   : > { %2331 = vrcp.f32 %v1370_v33  ;;  %v1836_v39 = vmul.f32 -1.442695, %v2771_v37 }
 0x2dd   : > { %v2322_v35 = vpop.eup %2321  ;;  %2333 = vpow2.f32 %v1837_v36 }
 0x2de   : > { %v2324_v38 = vpop.eup %2323  ;;  %v1415_v41 = vmul.f32 %v2322_v35, %v2063_v15  ;;  %2335 = vpow2.f32 %v1836_v39  ;;  %v2774_v42 = vpop.f32.mrb[16].mxu0 }
 0x2df   : > { %v1414_v40 = vmul.f32 %v2324_v38, %v1239_v60  ;;  %v1839_v44 = vmul.f32 -1.442695, %v2774_v42  ;;  %v2777_v46 = vpop.f32.mrb[17].mxu0 }
 0x2e0   : > { %v1838_v49 = vmul.f32 -1.442695, %v2777_v46 }
 0x2e1   : > { %v2326_v43 = vpop.eup %2325  ;;  %2093 = vmatprep.mubr.msk.f32.mxu1 %vm695_vm5, %v1414_v40  ;;  %2337 = vpow2.f32 %v1839_v44 }
 0x2e2   : > { %v2328_v47 = vpop.eup %2327  ;;  %2094 = vmatmul.mubr.msk.f32.vlgmr.msra.gmra.mrb[24].mxu1 %vm695_vm5, %v1415_v41  ;;  %v1417_v52 = vmul.f32 %v2326_v43, %v2066_v57  ;;  %2339 = vpow2.f32 %v1838_v49  ;;  %v2782_v53 = vpop.f32.mrb[18].mxu0 }
 0x2e3   : > { %v1416_v50 = vmul.f32 %v2328_v47, %v1249_v2  ;;  %v1841_v56 = vmul.f32 -1.442695, %v2782_v53  ;;  %v2785_v58 = vpop.f32.mrb[19].mxu0 }
 0x2e4   : > { %v1840_v61 = vmul.f32 -1.442695, %v2785_v58 }
 0x2e5   : > { %v2330_v55 = vpop.eup %2329  ;;  %2096 = vmatprep.mubr.msk.f32.mxu1 %vm695_vm5, %v1416_v50  ;;  %2341 = vpow2.f32 %v1841_v56 }
 0x2e6   : > { %v2332_v59 = vpop.eup %2331  ;;  %2097 = vmatmul.mubr.msk.f32.gmra.mrb[26].mxu1 %vm695_vm5, %v1417_v52  ;;  %v1419_v3 = vmul.f32 %v2330_v55, %v2069_v63  ;;  %2343 = vpow2.f32 %v1840_v61  ;;  %v2790_v4 = vpop.f32.mrb[20].mxu0 }
 0x2e7   : > { %v1418_v0 = vmul.f32 %v2332_v59, %v1259_v20  ;;  %v2334_v5 = vpop.eup %2333  ;;  %v1843_v6 = vmul.f32 -1.442695, %v2790_v4  ;;  %v1299_v7 = vpop.f32.mrb[21].mxu0 }
 0x2e8   : > { %v2336_v8 = vpop.eup %2335  ;;  %v1373_v9 = vadd.f32 1.0, %v2334_v5  ;;  %v1842_v10 = vmul.f32 -1.442695, %v1299_v7 }
 0x2e9   : > { %2099 = vmatprep.mubr.msk.f32.mxu1 %vm695_vm5, %v1418_v0  ;;  %v1372_v11 = vadd.f32 1.0, %v2336_v8  ;;  %2345 = vpow2.f32 %v1843_v6 }
 0x2ea   : > { %2100 = vmatmul.mubr.msk.f32.gmra.mrb[28].mxu1 %vm695_vm5, %v1419_v3  ;;  %2347 = vrcp.f32 %v1373_v9  ;;  %v2084_v12 = vpop.f32.mrb[22].mxu0 }
 0x2eb   : > { %v2338_v1 = vpop.eup %2337  ;;  %2349 = vrcp.f32 %v1372_v11  ;;  %v1845_v48 = vmul.f32 -1.442695, %v2084_v12  ;;  %v1309_v62 = vpop.f32.mrb[23].mxu0 }
 0x2ec   : > { %v2340_v13 = vpop.eup %2339  ;;  %v1375_v14 = vadd.f32 1.0, %v2338_v1  ;;  %2351 = vpow2.f32 %v1842_v10  ;;  %v1844_v45 = vmul.f32 -1.442695, %v1309_v62 }
 0x2ed   : > { %v1374_v54 = vadd.f32 1.0, %v2340_v13  ;;  %2353 = vpow2.f32 %v1845_v48 }
 0x2ee   : > { %2355 = vrcp.f32 %v1375_v14 }
 0x2ef   : > { %v2342_v15 = vpop.eup %2341  ;;  %2357 = vrcp.f32 %v1374_v54 }
 0x2f0   : > { %v2344_v51 = vpop.eup %2343  ;;  %v1377_v60 = vadd.f32 1.0, %v2342_v15  ;;  %2359 = vpow2.f32 %v1844_v45 }
 0x2f1   : > { %v1376_v16 = vadd.f32 1.0, %v2344_v51 }
 0x2f2   : > { %2361 = vrcp.f32 %v1377_v60 }
 0x2f3   : > { %v2346_v57 = vpop.eup %2345  ;;  %2363 = vrcp.f32 %v1376_v16 }
 0x2f4   : > { %v2348_v17 = vpop.eup %2347  ;;  %v1379_v2 = vadd.f32 1.0, %v2346_v57 }
 0x2f5   : > { %v2350_v18 = vpop.eup %2349  ;;  %v1421_v21 = vmul.f32 %v2348_v17, %v2768_v34 }
 0x2f6   : > { %v2352_v63 = vpop.eup %2351  ;;  %v1420_v19 = vmul.f32 %v2350_v18, %v2771_v37  ;;  %2365 = vrcp.f32 %v1379_v2 }
 0x2f7   : > { %v2354_v20 = vpop.eup %2353  ;;  %v1378_v22 = vadd.f32 1.0, %v2352_v63 }
 0x2f8   : > { %v2356_v23 = vpop.eup %2355  ;;  %v1381_v24 = vadd.f32 1.0, %v2354_v20  ;;  %2102 = vmatprep.mubr.msk.f32.mxu1 %vm695_vm5, %v1420_v19 }
 0x2f9   : > { %v2358_v25 = vpop.eup %2357  ;;  %2367 = vrcp.f32 %v1378_v22  ;;  %2103 = vmatmul.mubr.msk.f32.gmra.mrb[30].mxu1 %vm695_vm5, %v1421_v21  ;;  %v1423_v28 = vmul.f32 %v2356_v23, %v2774_v42  ;;  %v1846_v42 = vld [vmem:[%s2896_s8] ss:$0 sm:$0xff] }
 0x2fa   : > { %v2360_v26 = vpop.eup %2359  ;;  %v1422_v27 = vmul.f32 %v2358_v25, %v2777_v46  ;;  %2369 = vrcp.f32 %v1381_v24 }
 0x2fb   : > { %v1380_v29 = vadd.f32 1.0, %v2360_v26 }
 0x2fc   : > { %v2362_v30 = vpop.eup %2361  ;;  %2105 = vmatprep.mubr.msk.f32.mxu1 %vm695_vm5, %v1422_v27 }
 0x2fd   : > { %v2364_v31 = vpop.eup %2363  ;;  %2371 = vrcp.f32 %v1380_v29  ;;  %2106 = vmatmul.mubr.msk.f32.gmra.mrb[32].mxu1 %vm695_vm5, %v1423_v28  ;;  %v1425_v33 = vmul.f32 %v2362_v30, %v2782_v53 }
 0x2fe   : > { %v1424_v32 = vmul.f32 %v2364_v31, %v2785_v58 }
 0x300   : > { %2108 = vmatprep.mubr.msk.f32.mxu1 %vm695_vm5, %v1424_v32  ;;  %v2366_v34 = vpop.eup %2365 }
 0x301   : > { %2109 = vmatmul.mubr.msk.f32.gmra.mrb[34].mxu1 %vm695_vm5, %v1425_v33  ;;  %v1427_v37 = vmul.f32 %v2366_v34, %v2790_v4 }
 0x303   : > { %v2368_v35 = vpop.eup %2367 }
 0x304   : > { %v1426_v36 = vmul.f32 %v2368_v35, %v1299_v7  ;;  %v2370_v38 = vpop.eup %2369 }
 0x305   : > { %v1429_v41 = vmul.f32 %v2370_v38, %v2084_v12 }
 0x306   : > { %2111 = vmatprep.mubr.msk.f32.mxu1 %vm695_vm5, %v1426_v36 }
 0x307   : > { %v2372_v39 = vpop.eup %2371  ;;  %2112 = vmatmul.mubr.msk.f32.gmra.mrb[36].mxu1 %vm695_vm5, %v1427_v37 }
 0x308   : > { %v1428_v40 = vmul.f32 %v2372_v39, %v1309_v62 }
 0x30a   : > { %2114 = vmatprep.mubr.msk.f32.mxu1 %vm695_vm5, %v1428_v40 }
 0x30b   : > { %2115 = vmatmul.mubr.msk.f32.gmra.mrb[38].mxu1 %vm695_vm5, %v1429_v41 }
 0x3b5   : > { %v2095_v43 = vpop.f32.mrb[24].mxu1 }
 0x3b6   : > { %v1561_v44 = vadd.f32 %v2095_v43, %v1846_v42  ;;  %v1555_v46 = vpop.f32.mrb[25].mxu1 }
 0x3b7   : > { %v1556_v47 = vadd.f32 %v1846_v42, %v1555_v46 }
 0x3b8   : > { %1635 = vst [vmem:[%s2818_s22 + $0x8] sm:$0xff] %v1561_v44 }
 0x3b9   : > { %1634 = vst [vmem:[%s2818_s22] sm:$0xff] %v1556_v47  ;;  %v2098_v49 = vpop.f32.mrb[26].mxu1 }
 0x3ba   : > { %v1571_v50 = vadd.f32 %v2098_v49, %v1846_v42  ;;  %v1565_v52 = vpop.f32.mrb[27].mxu1 }
 0x3bb   : > { %v1566_v53 = vadd.f32 %v1846_v42, %v1565_v52 }
 0x3bc   : > { %1637 = vst [vmem:[%s2818_s22 + $0x18] sm:$0xff] %v1571_v50 }
 0x3bd   : > { %1636 = vst [vmem:[%s2818_s22 + $0x10] sm:$0xff] %v1566_v53  ;;  %v2101_v55 = vpop.f32.mrb[28].mxu1 }
 0x3be   : > { %v1581_v56 = vadd.f32 %v2101_v55, %v1846_v42  ;;  %v1575_v58 = vpop.f32.mrb[29].mxu1 }
 0x3bf   : > { %v1576_v59 = vadd.f32 %v1846_v42, %v1575_v58 }
 0x3c0   : > { %1639 = vst [vmem:[%s2818_s22 + $0x28] sm:$0xff] %v1581_v56 }
 0x3c1   : > { %1638 = vst [vmem:[%s2818_s22 + $0x20] sm:$0xff] %v1576_v59 }
 0x3cc   : > { %v2104_v61 = vpop.f32.mrb[30].mxu1 }
 0x3cd   : > { %v1591_v0 = vadd.f32 %v2104_v61, %v1846_v42  ;;  %v1585_v3 = vpop.f32.mrb[31].mxu1 }
 0x3ce   : > { %v1586_v4 = vadd.f32 %v1846_v42, %v1585_v3 }
 0x3cf   : > { %1641 = vst [vmem:[%s2818_s22 + $0x38] sm:$0xff] %v1591_v0 }
 0x3d0   : > { %1640 = vst [vmem:[%s2818_s22 + $0x30] sm:$0xff] %v1586_v4  ;;  %v2107_v5 = vpop.f32.mrb[32].mxu1 }
 0x3d1   : > { %v1601_v6 = vadd.f32 %v2107_v5, %v1846_v42  ;;  %v1595_v7 = vpop.f32.mrb[33].mxu1 }
 0x3d2   : > { %v1596_v8 = vadd.f32 %v1846_v42, %v1595_v7 }
 0x3d3   : > { %1643 = vst [vmem:[%s2818_s22 + $0x48] sm:$0xff] %v1601_v6 }
 0x3d4   : > { %1642 = vst [vmem:[%s2818_s22 + $0x40] sm:$0xff] %v1596_v8  ;;  %v2110_v9 = vpop.f32.mrb[34].mxu1 }
 0x3d5   : > { %v1611_v10 = vadd.f32 %v2110_v9, %v1846_v42  ;;  %v1605_v11 = vpop.f32.mrb[35].mxu1 }
 0x3d6   : > { %v1606_v12 = vadd.f32 %v1846_v42, %v1605_v11 }
 0x3d7   : > { %1645 = vst [vmem:[%s2818_s22 + $0x58] sm:$0xff] %v1611_v10 }
 0x3d8   : > { %1644 = vst [vmem:[%s2818_s22 + $0x50] sm:$0xff] %v1606_v12 }
 0x3da   : > { %v2113_v1 = vpop.f32.mrb[36].mxu1 }
 0x3db   : > { %v1621_v48 = vadd.f32 %v2113_v1, %v1846_v42  ;;  %v1615_v62 = vpop.f32.mrb[37].mxu1 }
 0x3dc   : > { %v1616_v13 = vadd.f32 %v1846_v42, %v1615_v62 }
 0x3dd   : > { %1647 = vst [vmem:[%s2818_s22 + $0x68] sm:$0xff] %v1621_v48 }
 0x3de   : > { %1646 = vst [vmem:[%s2818_s22 + $0x60] sm:$0xff] %v1616_v13  ;;  %v2116_v14 = vpop.f32.mrb[38].mxu1 }
 0x3df   : > { %v1631_v45 = vadd.f32 %v2116_v14, %v1846_v42  ;;  %v1625_v54 = vpop.f32.mrb[39].mxu1 }
 0x3e0   : > { %v1626_v15 = vadd.f32 %v1846_v42, %v1625_v54 }
 0x3e1   : > { %1649 = vst [vmem:[%s2818_s22 + $0x78] sm:$0xff] %v1631_v45 }
 0x3e2   : > { %1648 = vst [vmem:[%s2818_s22 + $0x70] sm:$0xff] %v1626_v15 }
 0x3e3   : > { %2386 = shalt.err (!%p2383_p3)
}
 0x3e4   : > { %s2387_s29 = scalar_lea.hbm %s2839_s26, 2048  ;;  %s2391_s23 = scalar_lea.hbm %s2897_s9, 4096 }
 0x3e5   : > { %p2388_p4 = scmp.ne.s32.totalorder %s2839_s26, %s2387_s29  ;;  %p2392_p9 = scmp.lt.u32.totalorder %s2839_s26, %s2897_s9 }
 0x3e6   : > { %p2393_p10 = scmp.lt.u32.totalorder %s2391_s23, %s2387_s29  ;;  %p2395_p12 = scmp.lt.u32.totalorder %s2387_s29, %s2839_s26 }
 0x3e7   : > { %p2389_p7 = pnand %p2388_p4, %p2529_p5 }
 0x3e8   : > { %p2394_p11 = por %p2393_p10, %p2392_p9 }
 0x3e9   : > { %p2390_p8 = pneg %p2389_p7 }
 0x3ea   : > { %p2396_p13 = por %p2395_p12, %p2394_p11 }
 0x3ec   : > { %p2397_p0 = pnand %p2396_p13, %p2390_p8 }
 0x3ee   : > { %2400 = shalt.err (!%p2397_p0)
}
 0x3ef   : > { %s2439_s27 = smov 128   ;;  %s2440_s28 = smov 8  }
 0x3f0   : > { %2171 = dma.vmem_to_hbm [thread:$0]  (%p2529_p5), %s2841_s24, 2048, %s2839_s26, %s2847_s13, %s2439_s27, %s2439_s27, %s2440_s28  }
 0x3f1 PF: > { %p2177_p1 = scmp.ge.s32.totalorder %s2435_s12, 2  ;;  %s1679_s16 = sand.u32 1, %s2423_s30  }
 0x3f2   : > { %s1680_s17 = scalar_lea.sflag [#allocation3], %s1679_s16 }
 0x3f3   : > { %p2174_p2 = pnand %p2177_p1, %p2533_p6 }
 0x3f5   : > { %2418 = dma.done.wait (!%p2174_p2), %s1680_s17, 2048  }
 0x3f6   : > { %2420 = vsyncadd (!%p2174_p2), %s1680_s17, 4294965248  ;;  %p19_p3 = scmp.ge.s32.totalorder %s2516_s15, 4   ;;  %s2902_s30 = smov %s2427_s10 }
 0x3f7   : > { %s2903_s10 = smov %s2431_s11  ;;  %s2904_s11 = smov %s2527_s18 }
 0x3f8   : > { %s2905_s12 = smov %s2516_s15  ;;  %21 = sbr.rel (!%p19_p3) target bundleno = 3 (0x3), region = 94 }
 0x3ff   :  { %1685 = vsyncpa [#allocation3], 1 }
 0x400   :  { %1687 = vsyncpa [#allocation3 + $0x1], 1 }

</bundles_post_ra>
